<compile_context>
chip_gen: v7x
topology: tpu7x:2x2x1
jax: 0.10.0
libtpu: 0.0.40
codegen_flags: <defaults>
</compile_context>

<pallas_src>
import functools

import jax
import jax.numpy as jnp
from jax.experimental import pallas as pl
from jax.experimental.pallas import tpu as pltpu


TM_CAP = 512                    # batch-tile cap (sublane-major dim)
TN_CAP = 512                    # output-column tile cap (lane dim)
TK_CAP = 512                    # K tile when K cannot be collapsed
K_COLLAPSE_MAX = 1024           # collapse K grid axis when padded F_in <= this
SMALL_BYTES = 4 << 20           # grid-less single-invocation threshold
VMEM_LIMIT = 32 * 1024 * 1024   # scoped VMEM limit for the pallas_calls


def _round_up(x, m):
    return ((x + m - 1) // m) * m


def _pad_to(a, target_shape):
    pads = [(0, t - s) for s, t in zip(a.shape, target_shape)]
    if any(hi for _, hi in pads):
        a = jnp.pad(a, pads)
    return a


# ---------------- small-problem path: single kernel invocation (no grid) ----------------

def _ensemble_linear_small_kernel(x_ref, w_ref, b_ref, o_ref):
    # x: (Ex, Np, Kp), w: (Ex, Kp, Cp), b: (Ex, 1, Cp), o: (Ex, Np, Cp)
    y = jnp.einsum('enk,eko->eno', x_ref[...], w_ref[...],
                   preferred_element_type=jnp.float32)
    o_ref[...] = (y + b_ref[...].astype(jnp.float32)).astype(o_ref.dtype)


# ---------------- tiled path, K collapsed: grid = (Ex, n, m), M innermost ----------------

def _matmul_bias_kernel(x_ref, w_ref, b_ref, o_ref):
    # x: (tm, Kp), w: (Kp, tn), b: (1, tn), o: (tm, tn)
    y = jnp.dot(x_ref[...], w_ref[...], preferred_element_type=jnp.float32)
    o_ref[...] = (y + b_ref[...].astype(jnp.float32)).astype(o_ref.dtype)


# ------------- tiled path, K tiled: grid = (Ex, m, n, k), f32 accumulator -------------

def _matmul_bias_acc_kernel(x_ref, w_ref, b_ref, o_ref, acc_ref):
    k = pl.program_id(3)

    @pl.when(k == 0)
    def _zero():
        acc_ref[...] = jnp.zeros_like(acc_ref)

    acc_ref[...] += jnp.dot(x_ref[...], w_ref[...],
                            preferred_element_type=jnp.float32)

    @pl.when(k == pl.num_programs(3) - 1)
    def _store():
        o_ref[...] = (acc_ref[...] + b_ref[...].astype(jnp.float32)).astype(o_ref.dtype)


@functools.partial(jax.jit, static_argnames=("use_bf16",))
def ensemble_linear(x, weight, bias, use_bf16=False):
    """Forward pass of EnsembleLinear.

    x:      (N, F_in)  or (E, N, F_in)
    weight: (E, F_in, F_out)
    bias:   (E, 1, F_out)
    returns (E, N, F_out)
    """
    E, F_in, F_out = weight.shape
    shared = (x.ndim == 2)
    out_dtype = x.dtype
    out_itemsize = jnp.dtype(out_dtype).itemsize

    if shared:
        # Fold the ensemble dim into the output columns: one wide matmul, x streamed once.
        N = x.shape[0]
        C = E * F_out
        x3 = x[None]                                                    # (1, N, F_in)
        w3 = jnp.transpose(weight, (1, 0, 2)).reshape(F_in, C)[None]    # (1, F_in, E*F_out)
        b3 = bias.reshape(1, 1, C)                                      # (1, 1, E*F_out)
    else:
        N = x.shape[1]
        C = F_out
        x3, w3, b3 = x, weight, bias
    Ex = x3.shape[0]

    # ---- tile sizes / padded shapes ----
    Kp0 = _round_up(F_in, 128)
    collapse_k = Kp0 <= K_COLLAPSE_MAX
    if collapse_k:
        tk = Kp0
        Kp = Kp0
    else:
        tk = TK_CAP
        Kp = _round_up(F_in, tk)

    tm = min(TM_CAP, _round_up(N, 8))
    Np = _round_up(N, tm)
    tn = min(TN_CAP, _round_up(C, 128))
    Cp = _round_up(C, tn)

    x3p = _pad_to(x3, (Ex, Np, Kp))
    w3p = _pad_to(w3, (Ex, Kp, Cp))
    b3p = _pad_to(b3, (Ex, 1, Cp))

    if use_bf16:
        x3p = x3p.astype(jnp.bfloat16)
        w3p = w3p.astype(jnp.bfloat16)

    out_shape = jax.ShapeDtypeStruct((Ex, Np, Cp), out_dtype)

    in_bytes = (x3p.size * x3p.dtype.itemsize
                + w3p.size * w3p.dtype.itemsize
                + b3p.size * b3p.dtype.itemsize)
    total_bytes = in_bytes + Ex * Np * Cp * out_itemsize
    cost = pl.CostEstimate(flops=2 * Ex * Np * Kp * Cp,
                           transcendentals=0,
                           bytes_accessed=int(total_bytes))

    if total_bytes <= SMALL_BYTES:
        # Whole padded problem fits comfortably in VMEM: one kernel body, no grid.
        out_p = pl.pallas_call(
            _ensemble_linear_small_kernel,
            out_shape=out_shape,
            compiler_params=pltpu.CompilerParams(vmem_limit_bytes=VMEM_LIMIT),
            cost_estimate=cost,
        )(x3p, w3p, b3p)
    elif collapse_k:
        # No reduction grid axis; M innermost so the weight/bias tile stays resident.
        out_p = pl.pallas_call(
            _matmul_bias_kernel,
            out_shape=out_shape,
            grid_spec=pltpu.PrefetchScalarGridSpec(
                num_scalar_prefetch=0,
                grid=(Ex, Cp // tn, Np // tm),
                in_specs=[
                    pl.BlockSpec((pl.Squeezed(), tm, Kp), lambda e, n, m: (e, m, 0)),
                    pl.BlockSpec((pl.Squeezed(), Kp, tn), lambda e, n, m: (e, 0, n)),
                    pl.BlockSpec((pl.Squeezed(), 1, tn), lambda e, n, m: (e, 0, n)),
                ],
                out_specs=pl.BlockSpec((pl.Squeezed(), tm, tn),
                                       lambda e, n, m: (e, m, n)),
            ),
            compiler_params=pltpu.CompilerParams(
                dimension_semantics=("parallel", "parallel", "parallel"),
                vmem_limit_bytes=VMEM_LIMIT,
            ),
            cost_estimate=cost,
        )(x3p, w3p, b3p)
    else:
        # Large F_in: K is tiled, last, "arbitrary"; f32 accumulator in VMEM scratch.
        out_p = pl.pallas_call(
            _matmul_bias_acc_kernel,
            out_shape=out_shape,
            grid_spec=pltpu.PrefetchScalarGridSpec(
                num_scalar_prefetch=0,
                grid=(Ex, Np // tm, Cp // tn, Kp // tk),
                in_specs=[
                    pl.BlockSpec((pl.Squeezed(), tm, tk), lambda e, m, n, k: (e, m, k)),
                    pl.BlockSpec((pl.Squeezed(), tk, tn), lambda e, m, n, k: (e, k, n)),
                    pl.BlockSpec((pl.Squeezed(), 1, tn), lambda e, m, n, k: (e, 0, n)),
                ],
                out_specs=pl.BlockSpec((pl.Squeezed(), tm, tn),
                                       lambda e, m, n, k: (e, m, n)),
                scratch_shapes=[pltpu.VMEM((tm, tn), jnp.float32)],
            ),
            compiler_params=pltpu.CompilerParams(
                dimension_semantics=("parallel", "parallel", "parallel", "arbitrary"),
                vmem_limit_bytes=VMEM_LIMIT,
            ),
            cost_estimate=cost,
        )(x3p, w3p, b3p)

    if shared:
        out_flat = out_p[0]                              # (Np, Cp)
        if Np != N or Cp != C:
            out_flat = out_flat[:N, :C]
        return out_flat.reshape(N, E, F_out).transpose(1, 0, 2)
    else:
        if Np != N or Cp != F_out:
            out_p = out_p[:, :N, :F_out]
        return out_p


def init_ensemble_linear_params(key, in_features, out_features, ensemble_size=7,
                                dtype=jnp.float32):
    # torch.nn.init.trunc_normal_(weight, std=1/(2*sqrt(in_features))), bias zeros.
    # TODO(synk): torch truncates at absolute [-2, 2] before std scaling; this truncates at +/-2 sigma.
    std = 1.0 / (2.0 * (in_features ** 0.5))
    w = jax.random.truncated_normal(
        key, -2.0, 2.0, (ensemble_size, in_features, out_features), dtype=dtype) * std
    b = jnp.zeros((ensemble_size, 1, out_features), dtype=dtype)
    return w, b


if __name__ == "__main__":
    key = jax.random.PRNGKey(0)
    keys = jax.random.split(key, 10)

    def ref_forward(x, w, b):
        if x.ndim == 2:
            return jnp.einsum('ij,bjk->bik', x, w,
                              precision=jax.lax.Precision.HIGHEST) + b
        return jnp.einsum('bij,bjk->bik', x, w,
                          precision=jax.lax.Precision.HIGHEST) + b

    def check(x, w, b, tol):
        out = jax.block_until_ready(ensemble_linear(x, w, b))
        ref = ref_forward(x, w, b)
        assert out.shape == ref.shape, (out.shape, ref.shape)
        err = float(jnp.max(jnp.abs(out - ref)))
        assert jnp.allclose(out, ref, atol=tol, rtol=tol), err

    # ---------- small shapes (single-invocation path), shared + per-member ----------
    E, F_in, F_out, N = 7, 32, 32, 8
    w1, b1 = init_ensemble_linear_params(keys[0], F_in, F_out, E)
    b1 = b1 + 0.05 * jax.random.normal(keys[1], b1.shape, dtype=jnp.float32)
    check(jax.random.normal(keys[2], (N, F_in), dtype=jnp.float32), w1, b1, 1e-4)
    check(jax.random.normal(keys[3], (E, N, F_in), dtype=jnp.float32), w1, b1, 1e-4)

    # ---------- mid shapes -> tiled path, K collapsed, multiple M tiles ----------
    E2, F_in2, F_out2, N2 = 3, 640, 384, 1024
    w2, b2 = init_ensemble_linear_params(keys[4], F_in2, F_out2, E2)
    b2 = b2 + 0.1 * jax.random.normal(keys[5], b2.shape, dtype=jnp.float32)
    check(jax.random.normal(keys[6], (N2, F_in2), dtype=jnp.float32), w2, b2, 2e-3)
    check(jax.random.normal(keys[7], (E2, N2, F_in2), dtype=jnp.float32), w2, b2, 2e-3)

    # ---------- large F_in -> tiled path with K accumulation ----------
    E3, F_in3, F_out3, N3 = 2, 1536, 256, 256
    w3_, b3_ = init_ensemble_linear_params(keys[8], F_in3, F_out3, E3)
    check(jax.random.normal(keys[9], (E3, N3, F_in3), dtype=jnp.float32), w3_, b3_, 2e-3)

    print("KERNEL_OK")
</pallas_src>

<mosaic_0001>
module attributes {stable_mosaic.version = 11 : i64} {
  func.func @_ensemble_linear_small_kernel(%arg0: memref<1x8x128xf32, #tpu.memory_space<vmem>>, %arg1: memref<1x128x256xf32, #tpu.memory_space<vmem>>, %arg2: memref<1x1x256xf32, #tpu.memory_space<vmem>>, %arg3: memref<1x8x256xf32, #tpu.memory_space<vmem>>) attributes {dimension_semantics = [], scalar_prefetch = 0 : i64, scratch_operands = 0 : i64, tpu.core_type = #tpu.core_type<tc>} {
    %c0 = arith.constant 0 : index
    %c0_0 = arith.constant 0 : index
    %c0_1 = arith.constant 0 : index
    %0 = vector.load %arg0[%c0, %c0_0, %c0_1] : memref<1x8x128xf32, #tpu.memory_space<vmem>>, vector<1x8x128xf32>
    %c0_2 = arith.constant 0 : index
    %c0_3 = arith.constant 0 : index
    %c0_4 = arith.constant 0 : index
    %1 = vector.load %arg1[%c0_2, %c0_3, %c0_4] : memref<1x128x256xf32, #tpu.memory_space<vmem>>, vector<1x128x256xf32>
    "tpu.trace_start"() <{level = 10 : i32, message = "enk,eko->eno"}> : () -> ()
    %cst = arith.constant dense<0.000000e+00> : vector<1x8x256xf32>
    %2 = tpu.matmul %0, %1, %cst {dimension_numbers = #tpu.dot_dimension_numbers<[2], [1], [1], [2], [0, 0, 0, 1, 1, 2], [0], [0]>} : vector<1x8x128xf32>, vector<1x128x256xf32>, vector<1x8x256xf32> -> vector<1x8x256xf32>
    "tpu.trace_stop"() : () -> ()
    %c0_5 = arith.constant 0 : index
    %c0_6 = arith.constant 0 : index
    %c0_7 = arith.constant 0 : index
    %3 = vector.load %arg2[%c0_5, %c0_6, %c0_7] : memref<1x1x256xf32, #tpu.memory_space<vmem>>, vector<1x1x256xf32>
    %4 = vector.broadcast %3 : vector<1x1x256xf32> to vector<1x8x256xf32>
    %5 = arith.addf %2, %4 : vector<1x8x256xf32>
    %c0_8 = arith.constant 0 : index
    %c0_9 = arith.constant 0 : index
    %c0_10 = arith.constant 0 : index
    %6 = vector.load %arg3[%c0_8, %c0_9, %c0_10] : memref<1x8x256xf32, #tpu.memory_space<vmem>>, vector<1x8x256xf32>
    tpu.vector_store %arg3[%c0_8, %c0_9, %c0_10], %5 {strides = array<i32>} : memref<1x8x256xf32, #tpu.memory_space<vmem>>, vector<1x8x256xf32>,
    return
  }
}

</mosaic_0001>

<bundles_post_ra>
// kernel: ensemble_linear.1
= control target key start
LH: loop header
LB: loop body
LE: loop exit
PB: predicated region body
PF: predicated region fallthrough
CT: control target
= control target key end

     0   :  { %v169_v3 = vmov 0.0   ;;  %v49_v50 = vlaneseq  ;;  %s298_s1 = inlined_call_operand.vmem [shape: f32[1,128,256], index: 1, kind: input, shape index: {}]   ;;  %s299_s0 = inlined_call_operand.vmem [shape: f32[1,8,128], index: 0, kind: input, shape index: {}]   ;;  %s300_s2 = inlined_call_operand.vmem [shape: f32[1,1,256], index: 2, kind: input, shape index: {}]   ;;  %s301_s3 = inlined_call_operand.vmem [shape: f32[1,8,256], index: 3, kind: output, shape index: {}]  }
   0x1   :  { %v16_v0 = vld [vmem:[%s298_s1 + $0x8] sm:$0xff]  ;;  %v18_v1 = vld [vmem:[%s298_s1 + $0x18] sm:$0xff]  ;;  %v15_v2 = vld [vmem:[%s298_s1] sm:$0xff]  ;;  %123 = vmatprep.mubr.f32.mxu0 %v169_v3 }
   0x2   :  { %v136_v4 = vpack.c.bf16 %v18_v1, %v16_v0  ;;  %v17_v5 = vld [vmem:[%s298_s1 + $0x10] sm:$0xff]  ;;  %v20_v6 = vld [vmem:[%s298_s1 + $0x28] sm:$0xff]  ;;  %v22_v7 = vld [vmem:[%s298_s1 + $0x38] sm:$0xff]  ;;  %v50_v51 = vshrl.u32 %v49_v50, 7 }
   0x3   :  { %v138_v8 = vpack.c.bf16 %v17_v5, %v15_v2  ;;  %v140_v9 = vpack.c.bf16 %v22_v7, %v20_v6  ;;  %v19_v10 = vld [vmem:[%s298_s1 + $0x20] sm:$0xff]  ;;  %v21_v11 = vld [vmem:[%s298_s1 + $0x30] sm:$0xff]  ;;  %v24_v12 = vld [vmem:[%s298_s1 + $0x48] sm:$0xff] }
   0x4   :  { %137 = vmatprep.subr.bf16.mxu0 %v136_v4  ;;  %v26_v13 = vld [vmem:[%s298_s1 + $0x58] sm:$0xff]  ;;  %v142_v14 = vpack.c.bf16 %v21_v11, %v19_v10  ;;  %v23_v16 = vld [vmem:[%s298_s1 + $0x40] sm:$0xff]  ;;  %v25_v17 = vld [vmem:[%s298_s1 + $0x50] sm:$0xff]  ;;  %v51_v52 = vsub.s32 0, %v50_v51  ;;  %v55_v54 = vsub.s32 1, %v50_v51 }
   0x5   :  { %139 = vmatpush1.bf16.msra.mxu0 %v138_v8  ;;  %v144_v15 = vpack.c.bf16 %v26_v13, %v24_v12  ;;  %v28_v18 = vld [vmem:[%s298_s1 + $0x68] sm:$0xff]  ;;  %v30_v19 = vld [vmem:[%s298_s1 + $0x78] sm:$0xff]  ;;  %v146_v20 = vpack.c.bf16 %v25_v17, %v23_v16  ;;  %v27_v22 = vld [vmem:[%s298_s1 + $0x60] sm:$0xff] }
   0x6   :  { %141 = vmatprep.subr.bf16.mxu0 %v140_v9  ;;  %v148_v21 = vpack.c.bf16 %v30_v19, %v28_v18  ;;  %v29_v23 = vld [vmem:[%s298_s1 + $0x70] sm:$0xff]  ;;  %v32_v24 = vld [vmem:[%s298_s1 + $0x88] sm:$0xff]  ;;  %v34_v25 = vld [vmem:[%s298_s1 + $0x98] sm:$0xff] }
   0x7   :  { %v150_v26 = vpack.c.bf16 %v29_v23, %v27_v22  ;;  %v152_v27 = vpack.c.bf16 %v34_v25, %v32_v24  ;;  %v31_v28 = vld [vmem:[%s298_s1 + $0x80] sm:$0xff]  ;;  %v33_v29 = vld [vmem:[%s298_s1 + $0x90] sm:$0xff]  ;;  %v36_v30 = vld [vmem:[%s298_s1 + $0xa8] sm:$0xff] }
   0x8   :  { %v38_v31 = vld [vmem:[%s298_s1 + $0xb8] sm:$0xff]  ;;  %v154_v32 = vpack.c.bf16 %v33_v29, %v31_v28  ;;  %v35_v34 = vld [vmem:[%s298_s1 + $0xa0] sm:$0xff]  ;;  %v37_v35 = vld [vmem:[%s298_s1 + $0xb0] sm:$0xff] }
   0x9   :  { %143 = vmatpush1.bf16.msra.mxu0 %v142_v14  ;;  %v156_v33 = vpack.c.bf16 %v38_v31, %v36_v30  ;;  %v40_v36 = vld [vmem:[%s298_s1 + $0xc8] sm:$0xff]  ;;  %v42_v37 = vld [vmem:[%s298_s1 + $0xd8] sm:$0xff]  ;;  %v158_v38 = vpack.c.bf16 %v37_v35, %v35_v34  ;;  %v39_v40 = vld [vmem:[%s298_s1 + $0xc0] sm:$0xff] }
   0xa   :  { %145 = vmatprep.subr.bf16.mxu0 %v144_v15  ;;  %v160_v39 = vpack.c.bf16 %v42_v37, %v40_v36  ;;  %v41_v41 = vld [vmem:[%s298_s1 + $0xd0] sm:$0xff]  ;;  %v44_v42 = vld [vmem:[%s298_s1 + $0xe8] sm:$0xff]  ;;  %v46_v43 = vld [vmem:[%s298_s1 + $0xf8] sm:$0xff] }
   0xb   :  { %v162_v44 = vpack.c.bf16 %v41_v41, %v39_v40  ;;  %v164_v45 = vpack.c.bf16 %v46_v43, %v44_v42  ;;  %v43_v46 = vld [vmem:[%s298_s1 + $0xe0] sm:$0xff]  ;;  %v45_v47 = vld [vmem:[%s298_s1 + $0xf0] sm:$0xff] }
   0xc   :  { %v166_v48 = vpack.c.bf16 %v45_v47, %v43_v46  ;;  %v14_v49 = vld [vmem:[%s299_s0] sm:$0xff] }
   0xd   :  { %147 = vmatpush1.bf16.msra.mxu0 %v146_v20  ;;  %v47_v53 = vld [vmem:[%s300_s2] sm:$0x3] }
   0xe   :  { %149 = vmatprep.subr.bf16.mxu0 %v148_v21  ;;  %v52_v55 = vrot.slane %v47_v53, %v51_v52  ;;  %v56_v56 = vrot.slane %v47_v53, %v55_v54 }
  0x11   :  { %151 = vmatpush1.bf16.msra.mxu0 %v150_v26 }
  0x12   :  { %153 = vmatprep.subr.bf16.mxu0 %v152_v27 }
  0x15   :  { %155 = vmatpush1.bf16.msra.mxu0 %v154_v32 }
  0x16   :  { %157 = vmatprep.subr.bf16.mxu0 %v156_v33 }
  0x19   :  { %159 = vmatpush1.bf16.msra.mxu0 %v158_v38 }
  0x1a   :  { %161 = vmatprep.subr.bf16.mxu0 %v160_v39 }
  0x1d   :  { %163 = vmatpush1.bf16.msra.mxu0 %v162_v44 }
  0x1e   :  { %165 = vmatprep.subr.bf16.mxu0 %v164_v45 }
  0x21   :  { %167 = vmatpush1.bf16.msra.mxu0 %v166_v48 }
  0x24   :  { %124 = vmatmul.mubr.f32.vlgmr.msra.gmra.mrb[0].mxu0 %v14_v49 }
  0xf7   :  { %v125_v57 = vpop.f32.mrb[0].mxu0 }
  0xf8   :  { %v126_v58 = vadd.f32 %v125_v57, %v52_v55  ;;  %v127_v59 = vpop.f32.mrb[1].mxu0 }
  0xf9   :  { %v128_v60 = vadd.f32 %v127_v59, %v56_v56 }
  0xfa   :  { %130 = vst [vmem:[%s301_s3] sm:$0xff] %v126_v58 }
  0xfb   :  { %131 = vst [vmem:[%s301_s3 + $0x8] sm:$0xff] %v128_v60 }

</bundles_post_ra>
